<compile_context>
chip_gen: v5e
topology: v5e:2x2
jax: 0.10.0
libtpu: 0.0.40
codegen_flags: <defaults>
</compile_context>

<pallas_src>
import jax
import jax.numpy as jnp
from jax.experimental import pallas as pl
from jax.experimental.pallas import tpu as pltpu


# -----------------------------------------------------------------------------
# Pallas kernel: fused 3x3 SAME conv over a flattened-NCHW image
# -----------------------------------------------------------------------------
def _sublane_group(dtype) -> int:
    # Native sublane tiling: 8 rows for 32-bit types, 16 for 16-bit (packed).
    return 8 * (4 // jnp.dtype(dtype).itemsize)


def _make_conv_kernel(H, W):
    """Fused 3x3 conv kernel body (closure over the static image geometry)."""

    def kernel(x_ref, w_ref, b_ref, m_ref, o_ref):
        # x_ref : (1, Cpad, H*W)      one image; channels on sublanes, flat HW on lanes
        # w_ref : (3, Ct, 3*Cpad)     fused weight; w[dy, o, dx*Cpad + ci], dy/dx in {-1,0,+1}
        # b_ref : (Ct, 1)             combined bias (f32)
        # m_ref : (4, H*W)            {0,1} in compute dtype: [top_ok, bot_ok, left_ok, right_ok]
        # o_ref : (1, Ct, H*W)        final dtype
        hw = x_ref.shape[2]
        x = x_ref[0]                                         # (Cpad, HW)

        # Column-boundary masks, hoisted; applied by multiply (no select).
        m_left = m_ref[2:3, :]                               # valid where w >= 1   (dx = -1)
        m_right = m_ref[3:4, :]                              # valid where w <= W-2 (dx = +1)

        # The only two intra-vreg +-1 lane rotations (XLU).  dy = +-1 taps are
        # derived from these below with +-W rolls, which are whole lane-block
        # moves whenever W is a multiple of 128 (the fast path).
        x_l = pltpu.roll(x, 1, 1) * m_left                   # tap[q] = x[q-1]
        x_r = pltpu.roll(x, hw - 1, 1) * m_right             # tap[q] = x[q+1]
        bases = (x_l, x, x_r)                                # dx = -1, 0, +1

        # Three accumulating MXU dots (K = 3*Cpad each) instead of one big
        # (9*Cpad, HW) im2col stack: 3x smaller live buffer, and the XLU/VPU
        # build of the next chunk overlaps the MXU matmul of the current one.
        acc = None
        for dy_idx, dy in enumerate((-1, 0, 1)):
            shift = (-dy * W) % hw
            taps = [b if shift == 0 else pltpu.roll(b, shift, 1) for b in bases]
            chunk = jnp.concatenate(taps, axis=0)            # (3*Cpad, HW)
            if dy == -1:
                chunk = chunk * m_ref[0:1, :]                # row 0 has no row above
            elif dy == 1:
                chunk = chunk * m_ref[1:2, :]                # row H-1 has no row below
            part = jnp.dot(w_ref[dy_idx], chunk,
                           preferred_element_type=jnp.float32)   # (Ct, HW) f32
            acc = part if acc is None else acc + part

        acc = acc + b_ref[...]                               # (Ct, 1) broadcast
        o_ref[0] = acc.astype(o_ref.dtype)                   # cast once, in-kernel

    return kernel


def _vmem_budget_bytes():
    """~75% of physical per-TensorCore VMEM (headroom for Mosaic scratch)."""
    try:
        cap = int(pltpu.get_tpu_info().vmem_capacity_bytes)
    except Exception:
        cap = 64 * 2 ** 20      # conservative fallback (v7x per-TC VMEM)
    return (cap * 3) // 4


def _conv3x3_fused(x_flat, w_fused, bias, masks, H, W, out_dtype, cout_blk):
    """x_flat: (N, Cpad, HW); w_fused: (3, Cout, 3*Cpad); bias: (Cout,1) f32;
    masks: (4, HW) compute dtype."""
    N, cpad, HW = x_flat.shape
    cout = w_fused.shape[1]
    n_ct = cout // cout_blk
    itm = jnp.dtype(x_flat.dtype).itemsize
    oitm = jnp.dtype(out_dtype).itemsize

    # Per-grid-step VMEM need, including the rolled/masked intermediates that
    # are live before each chunk matmul (previous estimate missed those).
    est = (2 * cpad * HW * itm                    # double-buffered input block
           + 2 * cout_blk * HW * oitm             # double-buffered output block
           + 2 * 3 * cout_blk * 3 * cpad * itm    # fused weight (2 bufs, tiny)
           + 2 * 4 * HW * itm + 2 * cout * 4      # masks + bias (2 bufs, tiny)
           + 3 * cpad * HW * itm                  # x_l / x_r / x bases live
           + 2 * 3 * cpad * HW * itm              # per-chunk taps + concat
           + cout_blk * HW * 4)                   # f32 accumulator
    vmem_limit = int(min(_vmem_budget_bytes(), max(32 * 2 ** 20, 2 * est)))

    cost = pl.CostEstimate(
        flops=2 * N * HW * (9 * cpad) * cout,
        transcendentals=0,
        bytes_accessed=int(x_flat.size * itm + w_fused.size * itm
                           + masks.size * itm + bias.size * 4
                           + N * cout * HW * oitm),
    )

    return pl.pallas_call(
        _make_conv_kernel(H, W),
        out_shape=jax.ShapeDtypeStruct((N, cout, HW), out_dtype),
        grid_spec=pltpu.PrefetchScalarGridSpec(
            num_scalar_prefetch=0,
            grid=(N, n_ct),
            in_specs=[
                pl.BlockSpec((1, cpad, HW), lambda n, c: (n, 0, 0)),
                pl.BlockSpec((3, cout_blk, 3 * cpad), lambda n, c: (0, c, 0)),
                pl.BlockSpec((cout_blk, 1), lambda n, c: (c, 0)),
                pl.BlockSpec((4, HW), lambda n, c: (0, 0)),
            ],
            out_specs=pl.BlockSpec((1, cout_blk, HW), lambda n, c: (n, c, 0)),
        ),
        compiler_params=pltpu.CompilerParams(
            dimension_semantics=("parallel", "parallel"),
            vmem_limit_bytes=vmem_limit,
        ),
        cost_estimate=cost,
    )(x_flat, w_fused, bias, masks)


# -----------------------------------------------------------------------------
# DEConv weight re-parameterization (plain-JAX glue, mirrors the PyTorch code)
# -----------------------------------------------------------------------------
def deconv_combined_params(params, theta=1.0):
    """Combine the 5 branch weights into a single (Cout, Cin, 3, 3) weight + bias."""
    # --- Conv2d_cd : center tap = w4 - sum(all 9) ---------------------------
    w_cd = params["w1"]                                     # (O, I, 3, 3)
    O, I = w_cd.shape[0], w_cd.shape[1]
    w_cd_flat = w_cd.reshape(O, I, 9)
    center = w_cd_flat[:, :, 4] - w_cd_flat.sum(axis=2)
    w1 = w_cd_flat.at[:, :, 4].set(center).reshape(O, I, 3, 3)

    # --- Conv2d_hd : 1D weight (O, I, 3) into columns 0 and 2 (negated) -----
    w_hd = params["w2"]                                     # (O, I, 3)
    w2f = jnp.zeros((O, I, 9), dtype=w_hd.dtype)
    w2f = w2f.at[:, :, jnp.array([0, 3, 6])].set(w_hd)
    w2f = w2f.at[:, :, jnp.array([2, 5, 8])].set(-w_hd)
    w2 = w2f.reshape(O, I, 3, 3)

    # --- Conv2d_vd : 1D weight (O, I, 3) into rows 0 and 2 (negated) --------
    w_vd = params["w3"]                                     # (O, I, 3)
    w3f = jnp.zeros((O, I, 9), dtype=w_vd.dtype)
    w3f = w3f.at[:, :, jnp.array([0, 1, 2])].set(w_vd)
    w3f = w3f.at[:, :, jnp.array([6, 7, 8])].set(-w_vd)
    w3 = w3f.reshape(O, I, 3, 3)

    # --- Conv2d_ad : w - theta * w[perm] -------------------------------------
    w_ad = params["w4"].reshape(O, I, 9)
    perm = jnp.array([3, 0, 1, 6, 4, 2, 7, 8, 5])
    w4 = (w_ad - theta * w_ad[:, :, perm]).reshape(O, I, 3, 3)

    # --- plain conv ----------------------------------------------------------
    w5 = params["w5"]                                       # (O, I, 3, 3)

    w = w1 + w2 + w3 + w4 + w5                              # (O, I, 3, 3)
    b = params["b1"] + params["b2"] + params["b3"] + params["b4"] + params["b5"]
    return w, b


def deconv_forward(x_nchw, params, *, theta=1.0, compute_dtype=jnp.bfloat16,
                   cout_block=None):
    """DEConv forward.  x_nchw: (N, C, H, W).  Returns (N, C, H, W) in x's dtype.

    compute_dtype: MXU operand dtype (bf16 default, f32 accumulation always).
    cout_block: optional output-channel tile (second grid axis for pipelining).
    """
    N, C, H, W = x_nchw.shape
    w_oihw, bias = deconv_combined_params(params, theta)
    O, I = w_oihw.shape[0], w_oihw.shape[1]

    cdt = jnp.dtype(compute_dtype) if compute_dtype is not None else jnp.dtype(x_nchw.dtype)
    out_dtype = jnp.dtype(x_nchw.dtype)
    group = _sublane_group(cdt)
    cpad = ((I + group - 1) // group) * group   # sublane-aligned channel count

    # (N,C,H,W) -> (N,C,H*W): pure reshape, no transpose, no padded HBM copy.
    x_flat = x_nchw.reshape(N, C, H * W).astype(cdt)
    if cpad != I:
        # Only hit when C is not a multiple of the sublane group.
        x_flat = jnp.pad(x_flat, ((0, 0), (0, cpad - I), (0, 0)))

    # Fused weight: (O,I,3,3) -> (3(dy), O, 3(dx), Ipad) -> (3, O, 3*Ipad).
    w_dyodxi = jnp.transpose(w_oihw, (2, 0, 3, 1))
    if cpad != I:
        w_dyodxi = jnp.pad(w_dyodxi, ((0, 0), (0, 0), (0, 0), (0, cpad - I)))
    w_fused = w_dyodxi.reshape(3, O, 3 * cpad).astype(cdt)

    b2 = bias.reshape(O, 1).astype(jnp.float32)

    # Precomputed {0,1} boundary masks in compute dtype (multiply, not select).
    p = jnp.arange(H * W, dtype=jnp.int32)
    hh, ww = p // W, p % W
    masks = jnp.stack([hh >= 1, hh <= H - 2, ww >= 1, ww <= W - 2],
                      axis=0).astype(cdt)                   # (4, H*W)

    # Output-channel tile for the second ("parallel") grid axis.
    cb = O if cout_block is None else min(int(cout_block), O)
    if O % cb != 0 or (cb != O and cb % 8 != 0):
        cb = O

    y_flat = _conv3x3_fused(x_flat, w_fused, b2, masks, H, W, out_dtype, cb)
    return y_flat.reshape(N, O, H, W)


# -----------------------------------------------------------------------------
# Deterministic parameter init (synthetic; matches the __init__ shapes)
# -----------------------------------------------------------------------------
def init_params(key, dim):
    ks = jax.random.split(key, 10)
    scale = 0.1
    return {
        "w1": scale * jax.random.normal(ks[0], (dim, dim, 3, 3), jnp.float32),
        "b1": scale * jax.random.normal(ks[1], (dim,), jnp.float32),
        "w2": scale * jax.random.normal(ks[2], (dim, dim, 3), jnp.float32),
        "b2": scale * jax.random.normal(ks[3], (dim,), jnp.float32),
        "w3": scale * jax.random.normal(ks[4], (dim, dim, 3), jnp.float32),
        "b3": scale * jax.random.normal(ks[5], (dim,), jnp.float32),
        "w4": scale * jax.random.normal(ks[6], (dim, dim, 3, 3), jnp.float32),
        "b4": scale * jax.random.normal(ks[7], (dim,), jnp.float32),
        "w5": scale * jax.random.normal(ks[8], (dim, dim, 3, 3), jnp.float32),
        "b5": scale * jax.random.normal(ks[9], (dim,), jnp.float32),
    }


if __name__ == "__main__":
    key = jax.random.PRNGKey(0)
    k_param, k_x = jax.random.split(key)

    N, C, H, W = 2, 4, 16, 16
    params = init_params(k_param, C)
    x = jax.random.normal(k_x, (N, C, H, W), jnp.float32)

    # Reference: XLA conv with the same combined weight/bias.
    w_ref, b_ref = deconv_combined_params(params)
    y_ref = jax.lax.conv_general_dilated(
        x, w_ref, window_strides=(1, 1), padding="SAME",
        dimension_numbers=("NCHW", "OIHW", "NCHW"),
    ) + b_ref.reshape(1, C, 1, 1)
    y_ref = jax.block_until_ready(y_ref)

    # f32 operand path (tight tolerance).
    y = jax.block_until_ready(deconv_forward(x, params, compute_dtype=jnp.float32))
    assert y.shape == (N, C, H, W), y.shape
    assert y.dtype == x.dtype, y.dtype
    assert jnp.allclose(y, y_ref, atol=1e-3, rtol=1e-3), (
        float(jnp.max(jnp.abs(y - y_ref)))
    )

    # Default path: bf16 operands, f32 accumulation -> looser tolerance.
    y_bf16 = jax.block_until_ready(deconv_forward(x, params))
    assert y_bf16.shape == (N, C, H, W), y_bf16.shape
    assert jnp.allclose(y_bf16, y_ref, atol=1e-1, rtol=5e-2), (
        float(jnp.max(jnp.abs(y_bf16 - y_ref)))
    )

    print("KERNEL_OK")
</pallas_src>

<mosaic_0001>
module attributes {stable_mosaic.version = 11 : i64} {
  func.func @kernel(%arg0: i32, %arg1: i32, %arg2: memref<1x8x256xf32, #tpu.memory_space<vmem>>, %arg3: memref<3x4x24xf32, #tpu.memory_space<vmem>>, %arg4: memref<4x1xf32, #tpu.memory_space<vmem>>, %arg5: memref<4x256xf32, #tpu.memory_space<vmem>>, %arg6: memref<1x4x256xf32, #tpu.memory_space<vmem>>) attributes {dimension_semantics = [#tpu.dimension_semantics<parallel>, #tpu.dimension_semantics<parallel>], iteration_bounds = array<i64: 2, 1>, scalar_prefetch = 0 : i64, scratch_operands = 0 : i64, tpu.core_type = #tpu.core_type<tc>, window_params = [{transform_indices = @transform_0, window_bounds = array<i64: 1, 8, 256>}, {transform_indices = @transform_1, window_bounds = array<i64: 3, 4, 24>}, {transform_indices = @transform_2, window_bounds = array<i64: 4, 1>}, {pipeline_mode = #tpu.pipeline_mode<synchronous>, transform_indices = @transform_3, window_bounds = array<i64: 4, 256>}, {transform_indices = @transform_4, window_bounds = array<i64: 1, 4, 256>}]} {
    %c0 = arith.constant 0 : index
    %c0_0 = arith.constant 0 : index
    %c0_1 = arith.constant 0 : index
    %0 = vector.load %arg2[%c0, %c0_0, %c0_1] : memref<1x8x256xf32, #tpu.memory_space<vmem>>, vector<1x8x256xf32>
    %1 = vector.shape_cast %0 : vector<1x8x256xf32> to vector<8x256xf32>
    %c2 = arith.constant 2 : index
    %c0_2 = arith.constant 0 : index
    %2 = vector.load %arg5[%c2, %c0_2] : memref<4x256xf32, #tpu.memory_space<vmem>>, vector<1x256xf32>
    %c3 = arith.constant 3 : index
    %c0_3 = arith.constant 0 : index
    %3 = vector.load %arg5[%c3, %c0_3] : memref<4x256xf32, #tpu.memory_space<vmem>>, vector<1x256xf32>
    %c1_i32 = arith.constant 1 : i32
    %4 = tpu.dynamic_rotate %1 by %c1_i32 dim 1 : vector<8x256xf32>, i32 -> vector<8x256xf32>
    %5 = vector.broadcast %2 : vector<1x256xf32> to vector<8x256xf32>
    %6 = arith.mulf %4, %5 : vector<8x256xf32>
    %c255_i32 = arith.constant 255 : i32
    %7 = tpu.dynamic_rotate %1 by %c255_i32 dim 1 : vector<8x256xf32>, i32 -> vector<8x256xf32>
    %8 = vector.broadcast %3 : vector<1x256xf32> to vector<8x256xf32>
    %9 = arith.mulf %7, %8 : vector<8x256xf32>
    %c16_i32 = arith.constant 16 : i32
    %10 = tpu.dynamic_rotate %6 by %c16_i32 dim 1 : vector<8x256xf32>, i32 -> vector<8x256xf32>
    %c16_i32_4 = arith.constant 16 : i32
    %11 = tpu.dynamic_rotate %1 by %c16_i32_4 dim 1 : vector<8x256xf32>, i32 -> vector<8x256xf32>
    %c16_i32_5 = arith.constant 16 : i32
    %12 = tpu.dynamic_rotate %9 by %c16_i32_5 dim 1 : vector<8x256xf32>, i32 -> vector<8x256xf32>
    %13 = tpu.concatenate %10, %11, %12 in 0 : vector<8x256xf32>, vector<8x256xf32>, vector<8x256xf32> -> vector<24x256xf32>
    %c0_6 = arith.constant 0 : index
    %c0_7 = arith.constant 0 : index
    %14 = vector.load %arg5[%c0_6, %c0_7] : memref<4x256xf32, #tpu.memory_space<vmem>>, vector<1x256xf32>
    %15 = vector.broadcast %14 : vector<1x256xf32> to vector<24x256xf32>
    %16 = arith.mulf %13, %15 : vector<24x256xf32>
    %c0_8 = arith.constant 0 : index
    %c0_9 = arith.constant 0 : index
    %c0_10 = arith.constant 0 : index
    %17 = vector.load %arg3[%c0_8, %c0_9, %c0_10] : memref<3x4x24xf32, #tpu.memory_space<vmem>>, vector<1x4x24xf32>
    %18 = vector.shape_cast %17 : vector<1x4x24xf32> to vector<4x24xf32>
    %cst = arith.constant dense<0.000000e+00> : vector<4x256xf32>
    %19 = tpu.matmul %18, %16, %cst {dimension_numbers = #tpu.dot_dimension_numbers<[1], [0], [0], [1], [0, 0, 1, 1], [], []>} : vector<4x24xf32>, vector<24x256xf32>, vector<4x256xf32> -> vector<4x256xf32>
    %20 = tpu.concatenate %6, %1, %9 in 0 : vector<8x256xf32>, vector<8x256xf32>, vector<8x256xf32> -> vector<24x256xf32>
    %c1 = arith.constant 1 : index
    %c0_11 = arith.constant 0 : index
    %c0_12 = arith.constant 0 : index
    %21 = vector.load %arg3[%c1, %c0_11, %c0_12] : memref<3x4x24xf32, #tpu.memory_space<vmem>>, vector<1x4x24xf32>
    %22 = vector.shape_cast %21 : vector<1x4x24xf32> to vector<4x24xf32>
    %cst_13 = arith.constant dense<0.000000e+00> : vector<4x256xf32>
    %23 = tpu.matmul %22, %20, %cst_13 {dimension_numbers = #tpu.dot_dimension_numbers<[1], [0], [0], [1], [0, 0, 1, 1], [], []>} : vector<4x24xf32>, vector<24x256xf32>, vector<4x256xf32> -> vector<4x256xf32>
    %24 = arith.addf %19, %23 : vector<4x256xf32>
    %c240_i32 = arith.constant 240 : i32
    %25 = tpu.dynamic_rotate %6 by %c240_i32 dim 1 : vector<8x256xf32>, i32 -> vector<8x256xf32>
    %c240_i32_14 = arith.constant 240 : i32
    %26 = tpu.dynamic_rotate %1 by %c240_i32_14 dim 1 : vector<8x256xf32>, i32 -> vector<8x256xf32>
    %c240_i32_15 = arith.constant 240 : i32
    %27 = tpu.dynamic_rotate %9 by %c240_i32_15 dim 1 : vector<8x256xf32>, i32 -> vector<8x256xf32>
    %28 = tpu.concatenate %25, %26, %27 in 0 : vector<8x256xf32>, vector<8x256xf32>, vector<8x256xf32> -> vector<24x256xf32>
    %c1_16 = arith.constant 1 : index
    %c0_17 = arith.constant 0 : index
    %29 = vector.load %arg5[%c1_16, %c0_17] : memref<4x256xf32, #tpu.memory_space<vmem>>, vector<1x256xf32>
    %30 = vector.broadcast %29 : vector<1x256xf32> to vector<24x256xf32>
    %31 = arith.mulf %28, %30 : vector<24x256xf32>
    %c2_18 = arith.constant 2 : index
    %c0_19 = arith.constant 0 : index
    %c0_20 = arith.constant 0 : index
    %32 = vector.load %arg3[%c2_18, %c0_19, %c0_20] : memref<3x4x24xf32, #tpu.memory_space<vmem>>, vector<1x4x24xf32>
    %33 = vector.shape_cast %32 : vector<1x4x24xf32> to vector<4x24xf32>
    %cst_21 = arith.constant dense<0.000000e+00> : vector<4x256xf32>
    %34 = tpu.matmul %33, %31, %cst_21 {dimension_numbers = #tpu.dot_dimension_numbers<[1], [0], [0], [1], [0, 0, 1, 1], [], []>} : vector<4x24xf32>, vector<24x256xf32>, vector<4x256xf32> -> vector<4x256xf32>
    %35 = arith.addf %24, %34 : vector<4x256xf32>
    %c0_22 = arith.constant 0 : index
    %c0_23 = arith.constant 0 : index
    %36 = vector.load %arg4[%c0_22, %c0_23] : memref<4x1xf32, #tpu.memory_space<vmem>>, vector<4x1xf32>
    %37 = vector.broadcast %36 : vector<4x1xf32> to vector<4x256xf32>
    %38 = arith.addf %35, %37 : vector<4x256xf32>
    %c0_24 = arith.constant 0 : index
    %c0_25 = arith.constant 0 : index
    %c0_26 = arith.constant 0 : index
    %39 = vector.load %arg6[%c0_24, %c0_25, %c0_26] : memref<1x4x256xf32, #tpu.memory_space<vmem>>, vector<1x4x256xf32>
    %40 = vector.shape_cast %39 : vector<1x4x256xf32> to vector<4x256xf32>
    %41 = vector.shape_cast %38 : vector<4x256xf32> to vector<1x4x256xf32>
    tpu.vector_store %arg6[%c0_24, %c0_25, %c0_26], %41 {strides = array<i32>} : memref<1x4x256xf32, #tpu.memory_space<vmem>>, vector<1x4x256xf32>,
    return
  }
  func.func @transform_0(%arg0: i32, %arg1: i32) -> (i32, i32, i32) {
    %c0_i32 = arith.constant 0 : i32
    %c0_i32_0 = arith.constant 0 : i32
    %c0_i32_1 = arith.constant 0 : i32
    return %arg0, %c0_i32, %c0_i32_0 : i32, i32, i32
  }
  func.func @transform_1(%arg0: i32, %arg1: i32) -> (i32, i32, i32) {
    %c0_i32 = arith.constant 0 : i32
    %c0_i32_0 = arith.constant 0 : i32
    %c0_i32_1 = arith.constant 0 : i32
    return %c0_i32, %arg1, %c0_i32_0 : i32, i32, i32
  }
  func.func @transform_2(%arg0: i32, %arg1: i32) -> (i32, i32) {
    %c0_i32 = arith.constant 0 : i32
    %c0_i32_0 = arith.constant 0 : i32
    return %arg1, %c0_i32 : i32, i32
  }
  func.func @transform_3(%arg0: i32, %arg1: i32) -> (i32, i32) {
    %c0_i32 = arith.constant 0 : i32
    %c0_i32_0 = arith.constant 0 : i32
    %c0_i32_1 = arith.constant 0 : i32
    return %c0_i32, %c0_i32_0 : i32, i32
  }
  func.func @transform_4(%arg0: i32, %arg1: i32) -> (i32, i32, i32) {
    %c0_i32 = arith.constant 0 : i32
    %c0_i32_0 = arith.constant 0 : i32
    return %arg0, %arg1, %c0_i32 : i32, i32, i32
  }
}

</mosaic_0001>

<bundles_post_ra>
// kernel: tpu_custom_call.1
= control target key start
LH: loop header
LB: loop body
LE: loop exit
PB: predicated region body
PF: predicated region fallthrough
CT: control target
= control target key end

     0   :  { %9 = vsyncpa [#allocation3], 0  ;;  %s1200_s0 = inlined_call_operand.hbm [shape: f32[2,8,256], index: 0, kind: input, shape index: {}]   ;;  %s1201_s1 = inlined_call_operand.hbm [shape: f32[3,4,24], index: 1, kind: input, shape index: {}]   ;;  %s1202_s2 = inlined_call_operand.vmem [shape: f32[4,1], index: 2, kind: input, shape index: {}]   ;;  %s1203_s3 = inlined_call_operand.hbm [shape: f32[4,256], index: 3, kind: input, shape index: {}]   ;;  %s1204_s4 = inlined_call_operand.hbm [shape: f32[2,4,256], index: 4, kind: output, shape index: {}]  }
   0x1   :  { %11 = vsyncpa [#allocation3 + $0x1], 0 }
   0x2   :  { %12 = vsyncpa [#allocation6], 0 }
   0x3   :  { %13 = vsyncpa [#allocation4], 0 }
   0x4   :  { %15 = vsyncpa [#allocation4 + $0x1], 0  ;;  %s1004_s15 = smov 0   ;;  %s1006_s16 = smov 0  }
   0x5   :  { %s1008_s17 = smov 0   ;;  %s1010_s18 = smov 0  }
   0x6   :  { %s1012_s19 = smov 0   ;;  %s1014_s20 = smov 0  }
   0x7 LB: > { %s672_s21 = sadd.s32 4294967295, %s968_s20   ;;  %p674_p0 = scmp.ge.s32.totalorder %s968_s20, 1  ;;  %s968_s20 = sphi %s1014_s20, %s21_s20   ;;  %s964_s19 = sphi %s1012_s19, %s1214_s19   ;;  %s960_s18 = sphi %s1010_s18, %s1213_s18   ;;  %s956_s17 = sphi %s1008_s17, %s1212_s17   ;;  %s952_s16 = sphi %s1006_s16, %s1211_s16   ;;  %s948_s15 = sphi %s1004_s15, %s1210_s15  }
   0x8   : > { %p1038_p1 = scmp.eq.s32.totalorder %s672_s21, 0  ;;  %p165_p2 = scmp.lt.s32.totalorder %s968_s20, 3 }
   0x9   : > { %s178_s25 = sshll.u32 %s1201_s1, 4  ;;  %s970_s27 = smov [#allocation5]   ;;  %s179_s25 = int_to_ptr.hbm [resolvable:$true] %s178_s25 }
   0xa   : > { %p1046_p3 = pnand %p674_p0, %p165_p2  ;;  %s180_s28 = sshll.u32 %s970_s27, 4  ;;  %s181_s28 = int_to_ptr.vmem [resolvable:$true] %s180_s28 }
   0xb   : > { %p678_p6 = scmp.ge.s32.totalorder %s968_s20, 2  ;;  %s200_s5 = sshll.u32 %s1203_s3, 4  ;;  %s201_s5 = int_to_ptr.hbm [resolvable:$true] %s200_s5 }
   0xc   : > { %p712_p4 = pneg %p1046_p3  ;;  %s971_s6 = smov 64  }
   0xd   : > { %s972_s7 = smov 4   ;;  %s973_s8 = smov [#allocation7]  }
   0xe   : > { %p713_p5 = pnand %p712_p4, %p1038_p1  ;;  %s202_s9 = sshll.u32 %s973_s8, 4  ;;  %s203_s9 = int_to_ptr.vmem [resolvable:$true] %s202_s9 }
   0xf   : > { %s33_s10 = sadd.s32 1, %s964_s19  ;;  %s673_s11 = sadd.s32 4294967294, %s968_s20  }
  0x10   : > { %715 = dma.hbm_to_vmem [thread:$0]  (!%p713_p5), %s179_s25, 192, %s181_s28, [#allocation6], %s971_s6, %s971_s6, %s972_s7  }
  0x11   : > { %718 = dma.hbm_to_vmem [thread:$0]  (!%p713_p5), %s201_s5, 128, %s203_s9, [#allocation6]  }
  0x12   : > { %p35_p7 = scmp.ge.s32.totalorder %s33_s10, 2  ;;  %s40_s12 = sadd.s32 1, %s956_s17 }
  0x13   : > { %p47_p8 = scmp.ne.s32.totalorder %s956_s17, %s952_s16  ;;  %p48_p9 = scmp.eq.s32.totalorder %s968_s20, 0 }
  0x14   : > { %s1216_s10 = smov (%p35_p7, %s33_s10), 0  ;;  %p53_p10 = scmp.ne.s32.totalorder %s952_s16, %s948_s15 }
  0x15   : > { %s37_s13 = ssub.s32 %s964_s19, %s1216_s10  ;;  %p152_p11 = scmp.eq.s32.totalorder %s672_s21, 1 }
  0x16   : > { %p38_p12 = scmp.eq.s32.totalorder %s37_s13, 0  ;;  %p1074_p13 = por %p1038_p1, %p53_p10 }
  0x17   : > { %p1078_p0 = por %p152_p11, %p47_p8  ;;  %p158_p2 = scmp.eq.s32.totalorder %s673_s11, 1 }
  0x18   : > { %s1083_s24 = scalar_select %p38_p12, %s956_s17, %s40_s12  }
  0x19   : > { %p49_p4 = por %p48_p9, %p47_p8  ;;  %p1085_p5 = por %p158_p2, %p53_p10 }
  0x1a   : > { %s213_s27 = sand.u32 1, %s956_s17   ;;  %s698_s21 = sshll.u32 %s964_s19, 4 }
  0x1b   : > { %p729_p7 = scmp.lt.s32.totalorder %s968_s20, 2  ;;  %s679_s28 = sshll.u32 %s213_s27, 4 }
  0x1c   : > { %s222_s5 = scalar_lea.hbm %s1200_s0, %s698_s21  ;;  %s217_s7 = scalar_lea.vmem [#allocation2], %s679_s28 }
  0x1d   : > { %s224_s6 = sshll.u32 %s222_s5, 4  ;;  %s226_s8 = sshll.u32 %s217_s7, 4  ;;  %s225_s6 = int_to_ptr.hbm [resolvable:$true] %s224_s6  ;;  %s227_s8 = int_to_ptr.vmem [resolvable:$true] %s226_s8 }
  0x1e   : > { %p720_p11 = pnand %p729_p7, %p49_p4  ;;  %s214_s9 = scalar_lea.sflag [#allocation3], %s213_s27 }
  0x1f   : > { %235 = sbr.rel (%p1046_p3) target bundleno = 432 (0x1b0), region = 36  ;;  %s1098_s11 = sand.u32 (!%p1046_p3), 1, %s952_s16  }
  0x20   : > { %722 = dma.hbm_to_vmem [thread:$0]  (!%p720_p11), %s225_s6, 256, %s227_s8, %s214_s9  }
  0x21   : > { %s683_s12 = sshll.u32 (!%p1046_p3), %s1098_s11, 4  ;;  %s238_s13 = scalar_lea.sflag (!%p1046_p3), [#allocation3], %s1098_s11 }
  0x22   : > { %s241_s21 = scalar_lea.vmem (!%p1046_p3), [#allocation2], %s683_s12 }
  0x24   : > { %935 = dma.done.wait (%p1074_p13), %s238_s13, 256  }
  0x25   : > { %937 = vsyncadd (%p1074_p13), %s238_s13, 4294967040 }
  0x26   : > { %939 = dma.done.wait (%p1038_p1), [#allocation6], 320  }
  0x27   : > { %941 = vsyncadd (%p1038_p1), [#allocation6], 4294966976  ;;  %v285_v0 = vld [vmem:[%s241_s21] sm:$0xff]  ;;  %s974_s26 = smov 1   ;;  %s975_s27 = smov 127   ;;  %v286_v1 = vld [vmem:[%s241_s21 + $0x8] sm:$0xff]  ;;  %v295_v2 = vlaneseq }
  0x28   : > { %291 = vrot.lane.b32.xlu1 %v285_v0, %s974_s26  ;;  %307 = vrot.lane.b32.xlu0 %v285_v0, %s975_s27  ;;  %s976_s28 = smov 16   ;;  %s977_s14 = smov 112   ;;  %v288_v5 = vld [vmem:[#allocation7 + $0x2] ss:$4 sm:$0x3]  ;;  %vm355_vm2 = vcmask 195584  }
  0x29   : > { %v1113_v6 = vand.u32 127, %v295_v2  ;;  %v290_v7 = vld [vmem:[#allocation7 + $0x3] ss:$4 sm:$0x3]  ;;  %v302_v8 = vperm.slane %v288_v5, 1  ;;  %v301_v19 = vperm.slane %v288_v5, 0 }
  0x2a   : > { %v315_v9 = vperm.slane %v290_v7, 0  ;;  %v316_v10 = vperm.slane %v290_v7, 1  ;;  %v354_v22 = vld [vmem:[#allocation5 + $0x4] sm:$0xf]  ;;  %v521_v31 = vld [vmem:[%s1202_s2] sm:$0xf] }
  0x2b   : > { %vm297_vm0 = vcmp.lt.s32.totalorder %v1113_v6, 1  ;;  %vm311_vm1 = vcmp.lt.s32.totalorder %v1113_v6, 127  ;;  %v340_v25 = vld [vmem:[#allocation7] ss:$4 sm:$0x3]  ;;  %vm325_vm3 = vcmp.lt.s32.totalorder %v1113_v6, 16 }
  0x2c   : > { %v342_v27 = vperm.slane %v340_v25, 0  ;;  %v343_v28 = vperm.slane %v340_v25, 1  ;;  %v978_v33 = vmov 0   ;;  %v462_v42 = vld [vmem:[#allocation7 + $0x1] ss:$4 sm:$0x3] }
  0x2d   : > { %790 = vset.pattern.permute.xlu1 %v978_v33  ;;  %791 = vset.pattern.permute.xlu0 %v978_v33  ;;  %vm446_vm4 = vcmp.lt.s32.totalorder %v1113_v6, 112  ;;  %v464_v43 = vperm.slane %v462_v42, 0  ;;  %v465_v44 = vperm.slane %v462_v42, 1  ;;  %v352_v56 = vld [vmem:[#allocation5] sm:$0xf]  ;;  %s686_s30 = sshll.u32 %s1098_s11, 3 }
  0x2e   : > { %s699_s5 = sshll.u32 %s960_s18, 3  ;;  %s280_s9 = scalar_lea.vmem [#allocation8], %s686_s30  ;;  %vm532_vm5 = vcmask 1043456  }
  0x2f   : > { %s550_s8 = scalar_lea.hbm %s1204_s4, %s699_s5  ;;  %s552_s12 = sshll.u32 %s280_s9, 4  ;;  %s553_s12 = int_to_ptr.vmem [resolvable:$true] %s552_s12 }
  0x30   : > { %293 = vrot.lane.b32.xlu1 %v286_v1, %s974_s26  ;;  %309 = vrot.lane.b32.xlu0 %v286_v1, %s975_s27  ;;  %s554_s13 = sshll.u32 %s550_s8, 4  ;;  %s537_s18 = scalar_lea.sflag [#allocation4], %s1098_s11  ;;  %s555_s13 = int_to_ptr.hbm [resolvable:$true] %s554_s13 }
  0x31   : > { %s896_s21 = sshra.s32 %s555_s13, 4  ;;  %s897_s21 = int_to_ptr.hbm [resolvable:$true] %s896_s21 }
  0x32   : > { %s898_s26 = scalar_lea.hbm %s897_s21, 8  ;;  %p903_p9 = scmp.lt.s32.totalorder %s897_s21, %s1204_s4 }
  0x33   : > { %p899_p1 = scmp.ne.s32.totalorder %s897_s21, %s898_s26 }
  0x35   : > { %p900_p3 = pnand %p899_p1, %p1078_p0 }
  0x37   : > { %p901_p8 = pneg %p900_p3 }
  0x38   : > { %328 = vrot.lane.b32.xlu0 %v285_v0, %s976_s28  ;;  %330 = vrot.lane.b32.xlu1 %v286_v1, %s976_s28 }
  0x40   : > { %449 = vrot.lane.b32.xlu0 %v285_v0, %s977_s14 }
  0x9a   : > { %v292_v3 = vpop.permute.xlu1 %291  ;;  %v308_v4 = vpop.permute.xlu0 %307 }
  0xa2   : > { %v294_v11 = vpop.permute.xlu1 %293  ;;  %v310_v12 = vpop.permute.xlu0 %309 }
  0xa3   : > { %v298_v13 = vsel %vm297_vm0, %v292_v3, %v294_v11  ;;  %v312_v14 = vsel %vm311_vm1, %v308_v4, %v310_v12  ;;  %v313_v15 = vsel %vm311_vm1, %v310_v12, %v308_v4  ;;  %v299_v20 = vsel %vm297_vm0, %v294_v11, %v292_v3  ;;  %v475_v4 = vld [vmem:[#allocation5 + $0x8] sm:$0xf] }
  0xa4   : > { %v306_v16 = vmul.f32 %v302_v8, %v298_v13  ;;  %v319_v17 = vmul.f32 %v315_v9, %v312_v14  ;;  %v320_v18 = vmul.f32 %v316_v10, %v313_v15  ;;  %v305_v21 = vmul.f32 %v301_v19, %v299_v20 }
  0xa6   : > { %323 = vrot.lane.b32.xlu0 %v306_v16, %s976_s28  ;;  %392 = vmatpush.msra.mxu1 %v320_v18 }
  0xa7   : > { %455 = vrot.lane.b32.xlu1 %v319_v17, %s977_s14  ;;  %334 = vrot.lane.b32.xlu2 %v319_v17, %s976_s28 }
  0xa8   : > { %372 = vmatpush.msra.mxu0 %v319_v17  ;;  %393 = vmatpush.msra.mxu1 %v286_v1 }
  0xaa   : > { %373 = vmatpush.msra.mxu0 %v285_v0  ;;  %394 = vmatpush.msra.mxu1 %v306_v16  ;;  %v329_v24 = vpop.permute.xlu0 %328  ;;  %v331_v26 = vpop.permute.xlu1 %330 }
  0xab   : > { %688 = vmatmul.msk.f32.vlgmr.msra.gmra.mxu1 %vm355_vm2, %v354_v22  ;;  %v332_v29 = vsel %vm325_vm3, %v329_v24, %v331_v26  ;;  %v333_v30 = vsel %vm325_vm3, %v331_v26, %v329_v24 }
  0xac   : > { %374 = vmatpush.msra.mxu0 %v305_v21  ;;  %v348_v38 = vmul.f32 %v342_v27, %v333_v30  ;;  %v349_v39 = vmul.f32 %v343_v28, %v332_v29 }
  0xad   : > { %687 = vmatmul.msk.f32.vlgmr.msra.gmra.mxu0 %vm355_vm2, %v354_v22 }
  0xae   : > { %444 = vrot.lane.b32.xlu0 %v306_v16, %s977_s14 }
  0xaf   : > { %451 = vrot.lane.b32.xlu1 %v286_v1, %s977_s14  ;;  %336 = vrot.lane.b32.xlu2 %v320_v18, %s976_s28 }
  0xb2   : > { %v450_v40 = vpop.permute.xlu0 %449 }
  0xb7   : > { %321 = vrot.lane.b32.xlu2 %v305_v21, %s976_s28  ;;  %524 = vperm.xlu1 %790, %v521_v31  }
  0xbf   : > { %457 = vrot.lane.b32.xlu2 %v320_v18, %s977_s14 }
  0xc7   : > { %442 = vrot.lane.b32.xlu2 %v305_v21, %s977_s14  ;;  %s902_s14 = scalar_lea.hbm %s1204_s4, 16 }
  0xc8   : > { %p904_p10 = scmp.lt.s32.totalorder %s902_s14, %s898_s26 }
  0xca   : > { %p905_p12 = por %p904_p10, %p903_p9 }
  0xcc   : > { %p906_p13 = pnand %p905_p12, %p901_p8 }
 0x101   : > { %v335_v23 = vpop.permute.xlu2 %334 }
 0x109   : > { %v337_v32 = vpop.permute.xlu2 %336 }
 0x10a   : > { %v339_v34 = vsel %vm325_vm3, %v337_v32, %v335_v23  ;;  %v338_v35 = vsel %vm325_vm3, %v335_v23, %v337_v32 }
 0x10b   : > { %v350_v36 = vmul.f32 %v342_v27, %v339_v34  ;;  %v351_v37 = vmul.f32 %v343_v28, %v338_v35 }
 0x10d   : > { %415 = vmatpush.msra.mxu2 %v350_v36  ;;  %435 = vmatpush.msra.mxu3 %v351_v37 }
 0x10f   : > { %416 = vmatpush.msra.mxu2 %v348_v38  ;;  %436 = vmatpush.msra.mxu3 %v349_v39 }
 0x111   : > { %v322_v41 = vpop.permute.xlu2 %321 }
 0x118   : > { %v324_v45 = vpop.permute.xlu0 %323 }
 0x119   : > { %v456_v46 = vpop.permute.xlu1 %455  ;;  %v458_v47 = vpop.permute.xlu2 %457  ;;  %v326_v48 = vsel %vm325_vm3, %v322_v41, %v324_v45  ;;  %v327_v49 = vsel %vm325_vm3, %v324_v45, %v322_v41 }
 0x11a   : > { %v459_v50 = vsel %vm446_vm4, %v456_v46, %v458_v47  ;;  %v460_v51 = vsel %vm446_vm4, %v458_v47, %v456_v46  ;;  %v346_v52 = vmul.f32 %v342_v27, %v327_v49  ;;  %v347_v53 = vmul.f32 %v343_v28, %v326_v48 }
 0x11b   : > { %v472_v54 = vmul.f32 %v464_v43, %v459_v50  ;;  %v473_v55 = vmul.f32 %v465_v44, %v460_v51 }
 0x11c   : > { %417 = vmatpush.msra.mxu2 %v346_v52  ;;  %437 = vmatpush.msra.mxu3 %v347_v53 }
 0x11d   : > { %492 = vmatpush.msrb.mxu0 %v472_v54  ;;  %512 = vmatpush.msrb.mxu1 %v473_v55 }
 0x11e   : > { %689 = vmatmul.msk.f32.vlgmr.msra.gmra.mxu2 %vm355_vm2, %v352_v56  ;;  %690 = vmatmul.msk.f32.vlgmr.msra.gmra.mxu3 %vm355_vm2, %v352_v56 }
 0x120   : > { %v445_v57 = vpop.permute.xlu0 %444 }
 0x121   : > { %v452_v58 = vpop.permute.xlu1 %451  ;;  %v443_v59 = vpop.permute.xlu2 %442 }
 0x122   : > { %v453_v60 = vsel %vm446_vm4, %v450_v40, %v452_v58  ;;  %v454_v61 = vsel %vm446_vm4, %v452_v58, %v450_v40  ;;  %v447_v62 = vsel %vm446_vm4, %v443_v59, %v445_v57  ;;  %v448_v63 = vsel %vm446_vm4, %v445_v57, %v443_v59 }
 0x123   : > { %v470_v0 = vmul.f32 %v464_v43, %v453_v60  ;;  %v471_v1 = vmul.f32 %v465_v44, %v454_v61  ;;  %v468_v2 = vmul.f32 %v464_v43, %v447_v62  ;;  %v469_v3 = vmul.f32 %v465_v44, %v448_v63 }
 0x125   : > { %493 = vmatpush.msrb.mxu0 %v470_v0  ;;  %513 = vmatpush.msrb.mxu1 %v471_v1 }
 0x127   : > { %494 = vmatpush.msrb.mxu0 %v468_v2  ;;  %514 = vmatpush.msrb.mxu1 %v469_v3 }
 0x128   : > { %691 = vmatmul.msk.f32.vlgmr.msrb.gmra.mxu0 %vm355_vm2, %v475_v4  ;;  %692 = vmatmul.msk.f32.vlgmr.msrb.gmra.mxu1 %vm355_vm2, %v475_v4  ;;  %v396_v7 = vpop.f32.mrf.mxu1 }
 0x129   : > { %v525_v11 = vpop.permute.xlu1 %524 }
 0x12a   : > { %v376_v5 = vpop.f32.mrf.mxu0 }
 0x1a1   : > { %v419_v8 = vpop.f32.mrf.mxu2  ;;  %v439_v6 = vpop.f32.mrf.mxu3 }
 0x1a2   : > { %v420_v9 = vadd.f32 %v419_v8, %v376_v5  ;;  %v440_v10 = vadd.f32 %v439_v6, %v396_v7 }
 0x1a5   : > { %v496_v12 = vpop.f32.mrf.mxu0  ;;  %v516_v13 = vpop.f32.mrf.mxu1 }
 0x1a6   : > { %v519_v14 = vadd.f32 %v496_v12, %v420_v9  ;;  %v520_v15 = vadd.f32 %v516_v13, %v440_v10 }
 0x1a8   : > { %v528_v16 = vadd.f32 %v525_v11, %v520_v15  ;;  %v527_v17 = vadd.f32 %v525_v11, %v519_v14 }
 0x1aa   : > { %v531_v18 = vrot.slane %v528_v16, 4 }
 0x1ac   : > { %v533_v19 = vsel %vm532_vm5, %v527_v17, %v531_v18 }
 0x1ad   : > { %535 = vst [vmem:[%s280_s9] sm:$0xff] %v533_v19 }
 0x1ae   : > { %909 = shalt.err (!%p906_p13)
}
 0x1af   : > { %710 = dma.vmem_to_hbm [thread:$0]  (%p1078_p0), %s553_s12, 128, %s555_s13, %s537_s18  }
 0x1b0 PF: > { %s566_s11 = sand.u32 1, %s948_s15   ;;  %p724_p2 = pnand %p678_p6, %p1085_p5 }
 0x1b1   : > { %s567_s30 = scalar_lea.sflag [#allocation4], %s566_s11 }
 0x1b2   : > { %p725_p4 = pneg %p724_p2 }
 0x1b4   : > { %943 = dma.done.wait (%p725_p4), %s567_s30, 128  }
 0x1b5   : > { %945 = vsyncadd (%p725_p4), %s567_s30, 4294967168  ;;  %s21_s20 = sadd.s32 1, %s968_s20   ;;  %s1210_s15 = smov %s952_s16 }
 0x1b6   : > { %p18_p7 = scmp.ge.s32.totalorder %s21_s20, 4   ;;  %s1211_s16 = smov %s956_s17 }
 0x1b7   : > { %s1212_s17 = smov %s1083_s24  ;;  %s1213_s18 = smov %s964_s19 }
 0x1b8   : > { %s1214_s19 = smov %s1216_s10  ;;  %20 = sbr.rel (!%p18_p7) target bundleno = 7 (0x7), region = 98 }
 0x1bd   :  { %573 = vsyncpa [#allocation3], 1 }
 0x1be   :  { %575 = vsyncpa [#allocation3 + $0x1], 1 }
 0x1bf   :  { %576 = vsyncpa [#allocation6], 1 }
 0x1c0   :  { %577 = vsyncpa [#allocation4], 1 }
 0x1c1   :  { %579 = vsyncpa [#allocation4 + $0x1], 1 }

</bundles_post_ra>
